<compile_context>
chip_gen: v7x
topology: tpu7x:2x2x1
jax: 0.10.0
libtpu: 0.0.40
codegen_flags: <defaults>
</compile_context>

<pallas_src>
import numpy as np

import jax
import jax.numpy as jnp
from jax.experimental import pallas as pl
from jax.experimental.pallas import tpu as pltpu


# ----------------------------------------------------------------------------
# Kernel: for each of q and k:  out = x*cos + pair_swap(x)*sin_signed
# x block:   (gb, r, W)   (gb groups, r packed rows per group, W lanes)
# cos/sin:   (r, W)       (one group's table, broadcast over gb)
# ----------------------------------------------------------------------------
def _rope_fused_kernel(q_ref, k_ref, cq_ref, sq_ref, ck_ref, sk_ref,
                       oq_ref, ok_ref):
    def _apply(x_ref, c_ref, s_ref, o_ref):
        x = x_ref[...].astype(jnp.float32)                       # (gb, r, W)
        w = x.shape[-1]
        ax = x.ndim - 1
        lane = jax.lax.broadcasted_iota(jnp.int32, x.shape, ax)
        # Adjacent-lane pair swap x[..., c] <- x[..., c ^ 1], exact in f32:
        up = pltpu.roll(x, w - 1, axis=ax)   # lane c holds x[..., c+1] (c < w-1)
        dn = pltpu.roll(x, 1, axis=ax)       # lane c holds x[..., c-1] (c > 0)
        x_sw = jnp.where(lane % 2 == 0, up, dn)
        out = x * c_ref[...][None, :, :] + x_sw * s_ref[...][None, :, :]
        o_ref[...] = out.astype(o_ref.dtype)

    _apply(q_ref, cq_ref, sq_ref, oq_ref)
    _apply(k_ref, ck_ref, sk_ref, ok_ref)


def _rope_fused_call(q3, k3, cos_q, sin_q, cos_k, sin_k, gb):
    G, rq, wq = q3.shape
    _, rk, wk = k3.shape
    grid = G // gb

    q_blk = pl.BlockSpec((gb, rq, wq), lambda i: (i, 0, 0))
    k_blk = pl.BlockSpec((gb, rk, wk), lambda i: (i, 0, 0))
    cq_blk = pl.BlockSpec((rq, wq), lambda i: (0, 0))   # resident constants
    ck_blk = pl.BlockSpec((rk, wk), lambda i: (0, 0))

    return pl.pallas_call(
        _rope_fused_kernel,
        out_shape=(jax.ShapeDtypeStruct(q3.shape, q3.dtype),
                   jax.ShapeDtypeStruct(k3.shape, k3.dtype)),
        grid=(grid,),
        in_specs=[q_blk, k_blk, cq_blk, cq_blk, ck_blk, ck_blk],
        out_specs=(pl.BlockSpec((gb, rq, wq), lambda i: (i, 0, 0)),
                   pl.BlockSpec((gb, rk, wk), lambda i: (i, 0, 0))),
        compiler_params=pltpu.CompilerParams(
            dimension_semantics=("parallel",),        # megacore split on v7x
            vmem_limit_bytes=32 << 20),               # explicit, safe on v5e/v6e/v7x
    )(q3, k3, cos_q, sin_q, cos_k, sin_k)


# ----------------------------------------------------------------------------
# Static-shape tiling heuristics (pure Python)
# ----------------------------------------------------------------------------
def _row_pack(seq_len, head_dim, target_lanes=128):
    """Smallest m dividing seq_len with m*head_dim >= 128 (lane-dense rows)."""
    for m in range(1, seq_len + 1):
        if seq_len % m == 0 and m * head_dim >= target_lanes:
            return m
    return seq_len


def _pick_groups_per_block(num_groups, bytes_per_group, *,
                           max_block_bytes=2 << 20,
                           min_block_bytes=1 << 20,
                           target_grid=8):
    """Groups per grid block: prefer >=target_grid blocks of >=min_block_bytes;
    otherwise the largest block within budget that still leaves >=2 blocks."""
    divisors = [g for g in range(1, num_groups + 1) if num_groups % g == 0]
    fit = [g for g in divisors if g * bytes_per_group <= max_block_bytes]
    if not fit:
        return 1
    good = [g for g in fit
            if num_groups // g >= target_grid
            and g * bytes_per_group >= min_block_bytes]
    if good:
        return max(good)
    ge2 = [g for g in fit if num_groups // g >= 2]
    if ge2:
        return max(ge2)
    return max(fit)


# ----------------------------------------------------------------------------
# Module-equivalent API: make_rope(...) -> forward(q, k)
# ----------------------------------------------------------------------------
def make_rope(head_dim, num_latents, rope_base):
    """Equivalent of RoPE.__init__; tables precomputed once in NumPy (hoisted)."""
    assert head_dim % 2 == 0, "Dimension must be even for RoPE."
    theta = 1.0 / (np.float32(rope_base) **
                   (np.arange(0, head_dim, 2, dtype=np.float32) / np.float32(head_dim)))
    seq_idx = np.arange(num_latents, dtype=np.float32)
    idx_theta = seq_idx[:, None] * theta[None, :]                  # (L, D/2)
    cos_h = np.cos(idx_theta).astype(np.float32)
    sin_h = np.sin(idx_theta).astype(np.float32)
    cos_full = np.repeat(cos_h, 2, axis=-1)                        # c0 c0 c1 c1 ...
    sin_signed = np.stack([-sin_h, sin_h], axis=-1).reshape(
        num_latents, head_dim).astype(np.float32)                  # -s0 s0 -s1 s1 ...

    def forward(q, k):
        b, h, nq, d = q.shape
        bk, hk, nk, dk = k.shape
        assert d == head_dim and dk == head_dim and (b, h) == (bk, hk)
        assert nq <= num_latents, (
            f"Query sequence length {nq} exceeds RoPE's max length {num_latents}")
        assert nk <= num_latents, (
            f"Key sequence length {nk} exceeds RoPE's max length {num_latents}")

        mq, mk = _row_pack(nq, d), _row_pack(nk, d)
        rq, wq = nq // mq, mq * d
        rk, wk = nk // mk, mk * d
        G = b * h

        # Per-group packed tables (NumPy -> compile-time constants).
        cos_q = jnp.asarray(cos_full[:nq].reshape(rq, wq))
        sin_q = jnp.asarray(sin_signed[:nq].reshape(rq, wq))
        cos_k = jnp.asarray(cos_full[:nk].reshape(rk, wk))
        sin_k = jnp.asarray(sin_signed[:nk].reshape(rk, wk))

        itemsize = jnp.dtype(q.dtype).itemsize
        bytes_per_group = (rq * wq + rk * wk) * itemsize
        gb = _pick_groups_per_block(G, bytes_per_group)

        # Free row-major reshapes only (no HBM transpose / strided-slice copies).
        q3 = q.reshape(G, rq, wq)
        k3 = k.reshape(G, rk, wk)
        oq3, ok3 = _rope_fused_call(q3, k3, cos_q, sin_q, cos_k, sin_k, gb)
        return oq3.reshape(b, h, nq, d), ok3.reshape(b, h, nk, d)

    return forward


# ----------------------------------------------------------------------------
# Pure-JAX reference (mirrors torch.view_as_complex * torch.polar exactly)
# ----------------------------------------------------------------------------
def rope_reference(q, k, num_latents, rope_base):
    d = q.shape[-1]
    theta = 1.0 / (rope_base ** (jnp.arange(0, d, 2, dtype=jnp.float32) / d))
    idx_theta = jnp.arange(num_latents, dtype=jnp.float32)[:, None] * theta[None, :]
    cos_t, sin_t = jnp.cos(idx_theta), jnp.sin(idx_theta)

    def apply(x):
        s = x.shape[-2]
        xe, xo = x[..., 0::2], x[..., 1::2]
        c, sn = cos_t[:s], sin_t[:s]
        re = xe * c - xo * sn
        im = xe * sn + xo * c
        return jnp.stack([re, im], axis=-1).reshape(x.shape).astype(x.dtype)

    return apply(q), apply(k)


# ----------------------------------------------------------------------------
if __name__ == "__main__":
    # Shapes consistent with DiTConfig: dim=512, num_heads=8 -> head_dim=64,
    # num_latents=32 (RoPE max length), rope_base=100000.
    num_latents = 32
    rope_base = 100000
    num_heads = 8
    head_dim = 512 // num_heads          # 64 (even -> RoPE ok)
    B, Nq, Nk = 2, 32, 16

    key = jax.random.PRNGKey(0)
    kq, kk = jax.random.split(key)
    q = jax.random.normal(kq, (B, num_heads, Nq, head_dim), jnp.float32)
    k = jax.random.normal(kk, (B, num_heads, Nk, head_dim), jnp.float32)

    rope = make_rope(head_dim, num_latents, rope_base)
    rope_jit = jax.jit(rope)
    q_out, k_out = jax.block_until_ready(rope_jit(q, k))

    q_ref, k_ref = rope_reference(q, k, num_latents, rope_base)

    assert q_out.shape == q.shape and k_out.shape == k.shape
    err_q = float(jnp.max(jnp.abs(q_out - q_ref)))
    err_k = float(jnp.max(jnp.abs(k_out - k_ref)))
    assert err_q < 1e-4 and err_k < 1e-4, f"max abs err q={err_q}, k={err_k}"

    print("KERNEL_OK")
</pallas_src>

<mosaic_0001>
module attributes {stable_mosaic.version = 11 : i64} {
  func.func @_rope_fused_kernel(%arg0: i32, %arg1: memref<8x16x128xf32, #tpu.memory_space<vmem>>, %arg2: memref<8x8x128xf32, #tpu.memory_space<vmem>>, %arg3: memref<16x128xf32, #tpu.memory_space<vmem>>, %arg4: memref<16x128xf32, #tpu.memory_space<vmem>>, %arg5: memref<8x128xf32, #tpu.memory_space<vmem>>, %arg6: memref<8x128xf32, #tpu.memory_space<vmem>>, %arg7: memref<8x16x128xf32, #tpu.memory_space<vmem>>, %arg8: memref<8x8x128xf32, #tpu.memory_space<vmem>>) attributes {dimension_semantics = [#tpu.dimension_semantics<parallel>], iteration_bounds = array<i64: 2>, scalar_prefetch = 0 : i64, scratch_operands = 0 : i64, tpu.core_type = #tpu.core_type<tc>, window_params = [{transform_indices = @transform_0, window_bounds = array<i64: 8, 16, 128>}, {transform_indices = @transform_1, window_bounds = array<i64: 8, 8, 128>}, {pipeline_mode = #tpu.pipeline_mode<synchronous>, transform_indices = @transform_2, window_bounds = array<i64: 16, 128>}, {pipeline_mode = #tpu.pipeline_mode<synchronous>, transform_indices = @transform_3, window_bounds = array<i64: 16, 128>}, {pipeline_mode = #tpu.pipeline_mode<synchronous>, transform_indices = @transform_4, window_bounds = array<i64: 8, 128>}, {pipeline_mode = #tpu.pipeline_mode<synchronous>, transform_indices = @transform_5, window_bounds = array<i64: 8, 128>}, {transform_indices = @transform_6, window_bounds = array<i64: 8, 16, 128>}, {transform_indices = @transform_7, window_bounds = array<i64: 8, 8, 128>}]} {
    %c0 = arith.constant 0 : index
    %c0_0 = arith.constant 0 : index
    %c0_1 = arith.constant 0 : index
    %0 = vector.load %arg1[%c0, %c0_0, %c0_1] : memref<8x16x128xf32, #tpu.memory_space<vmem>>, vector<8x16x128xf32>
    %1 = tpu.iota {dimensions = array<i32: 2>} : vector<8x16x128xi32>
    %c127_i32 = arith.constant 127 : i32
    %2 = tpu.dynamic_rotate %0 by %c127_i32 dim 2 : vector<8x16x128xf32>, i32 -> vector<8x16x128xf32>
    %c1_i32 = arith.constant 1 : i32
    %3 = tpu.dynamic_rotate %0 by %c1_i32 dim 2 : vector<8x16x128xf32>, i32 -> vector<8x16x128xf32>
    %c2_i32 = arith.constant 2 : i32
    %c0_i32 = arith.constant 0 : i32
    %4 = arith.cmpi eq, %c2_i32, %c0_i32 : i32
    %c1_i32_2 = arith.constant 1 : i32
    %5 = arith.select %4, %c1_i32_2, %c2_i32 : i32
    %6 = vector.broadcast %5 : i32 to vector<8x16x128xi32>
    %7 = arith.remsi %1, %6 : vector<8x16x128xi32>
    %c0_i32_3 = arith.constant 0 : i32
    %8 = vector.broadcast %c0_i32_3 : i32 to vector<8x16x128xi32>
    %9 = arith.cmpi ne, %7, %8 : vector<8x16x128xi32>
    %c0_i32_4 = arith.constant 0 : i32
    %10 = vector.broadcast %c0_i32_4 : i32 to vector<8x16x128xi32>
    %11 = arith.cmpi slt, %7, %10 : vector<8x16x128xi32>
    %c0_i32_5 = arith.constant 0 : i32
    %12 = arith.cmpi slt, %5, %c0_i32_5 : i32
    %13 = vector.broadcast %12 : i1 to vector<8x16x128xi1>
    %14 = vector.broadcast %13 : vector<8x16x128xi1> to vector<8x16x128xi1>
    %15 = arith.xori %11, %14 : vector<8x16x128xi1>
    %16 = arith.andi %15, %9 : vector<8x16x128xi1>
    %17 = vector.broadcast %5 : i32 to vector<8x16x128xi32>
    %18 = arith.addi %7, %17 : vector<8x16x128xi32>
    %19 = arith.select %16, %18, %7 : vector<8x16x128xi1>, vector<8x16x128xi32>
    %c0_i32_6 = arith.constant 0 : i32
    %20 = vector.broadcast %c0_i32_6 : i32 to vector<8x16x128xi32>
    %21 = arith.cmpi eq, %19, %20 : vector<8x16x128xi32>
    %22 = arith.select %21, %2, %3 : vector<8x16x128xi1>, vector<8x16x128xf32>
    %c0_7 = arith.constant 0 : index
    %c0_8 = arith.constant 0 : index
    %23 = vector.load %arg3[%c0_7, %c0_8] : memref<16x128xf32, #tpu.memory_space<vmem>>, vector<16x128xf32>
    %24 = vector.shape_cast %23 : vector<16x128xf32> to vector<1x16x128xf32>
    %25 = vector.broadcast %24 : vector<1x16x128xf32> to vector<8x16x128xf32>
    %26 = arith.mulf %0, %25 : vector<8x16x128xf32>
    %c0_9 = arith.constant 0 : index
    %c0_10 = arith.constant 0 : index
    %27 = vector.load %arg4[%c0_9, %c0_10] : memref<16x128xf32, #tpu.memory_space<vmem>>, vector<16x128xf32>
    %28 = vector.shape_cast %27 : vector<16x128xf32> to vector<1x16x128xf32>
    %29 = vector.broadcast %28 : vector<1x16x128xf32> to vector<8x16x128xf32>
    %30 = arith.mulf %22, %29 : vector<8x16x128xf32>
    %31 = arith.addf %26, %30 : vector<8x16x128xf32>
    %c0_11 = arith.constant 0 : index
    %c0_12 = arith.constant 0 : index
    %c0_13 = arith.constant 0 : index
    %32 = vector.load %arg7[%c0_11, %c0_12, %c0_13] : memref<8x16x128xf32, #tpu.memory_space<vmem>>, vector<8x16x128xf32>
    tpu.vector_store %arg7[%c0_11, %c0_12, %c0_13], %31 {strides = array<i32>} : memref<8x16x128xf32, #tpu.memory_space<vmem>>, vector<8x16x128xf32>,
    %c0_14 = arith.constant 0 : index
    %c0_15 = arith.constant 0 : index
    %c0_16 = arith.constant 0 : index
    %33 = vector.load %arg2[%c0_14, %c0_15, %c0_16] : memref<8x8x128xf32, #tpu.memory_space<vmem>>, vector<8x8x128xf32>
    %34 = tpu.iota {dimensions = array<i32: 2>} : vector<8x8x128xi32>
    %c127_i32_17 = arith.constant 127 : i32
    %35 = tpu.dynamic_rotate %33 by %c127_i32_17 dim 2 : vector<8x8x128xf32>, i32 -> vector<8x8x128xf32>
    %c1_i32_18 = arith.constant 1 : i32
    %36 = tpu.dynamic_rotate %33 by %c1_i32_18 dim 2 : vector<8x8x128xf32>, i32 -> vector<8x8x128xf32>
    %c2_i32_19 = arith.constant 2 : i32
    %c0_i32_20 = arith.constant 0 : i32
    %37 = arith.cmpi eq, %c2_i32_19, %c0_i32_20 : i32
    %c1_i32_21 = arith.constant 1 : i32
    %38 = arith.select %37, %c1_i32_21, %c2_i32_19 : i32
    %39 = vector.broadcast %38 : i32 to vector<8x8x128xi32>
    %40 = arith.remsi %34, %39 : vector<8x8x128xi32>
    %c0_i32_22 = arith.constant 0 : i32
    %41 = vector.broadcast %c0_i32_22 : i32 to vector<8x8x128xi32>
    %42 = arith.cmpi ne, %40, %41 : vector<8x8x128xi32>
    %c0_i32_23 = arith.constant 0 : i32
    %43 = vector.broadcast %c0_i32_23 : i32 to vector<8x8x128xi32>
    %44 = arith.cmpi slt, %40, %43 : vector<8x8x128xi32>
    %c0_i32_24 = arith.constant 0 : i32
    %45 = arith.cmpi slt, %38, %c0_i32_24 : i32
    %46 = vector.broadcast %45 : i1 to vector<8x8x128xi1>
    %47 = vector.broadcast %46 : vector<8x8x128xi1> to vector<8x8x128xi1>
    %48 = arith.xori %44, %47 : vector<8x8x128xi1>
    %49 = arith.andi %48, %42 : vector<8x8x128xi1>
    %50 = vector.broadcast %38 : i32 to vector<8x8x128xi32>
    %51 = arith.addi %40, %50 : vector<8x8x128xi32>
    %52 = arith.select %49, %51, %40 : vector<8x8x128xi1>, vector<8x8x128xi32>
    %c0_i32_25 = arith.constant 0 : i32
    %53 = vector.broadcast %c0_i32_25 : i32 to vector<8x8x128xi32>
    %54 = arith.cmpi eq, %52, %53 : vector<8x8x128xi32>
    %55 = arith.select %54, %35, %36 : vector<8x8x128xi1>, vector<8x8x128xf32>
    %c0_26 = arith.constant 0 : index
    %c0_27 = arith.constant 0 : index
    %56 = vector.load %arg5[%c0_26, %c0_27] : memref<8x128xf32, #tpu.memory_space<vmem>>, vector<8x128xf32>
    %57 = vector.shape_cast %56 : vector<8x128xf32> to vector<1x8x128xf32>
    %58 = vector.broadcast %57 : vector<1x8x128xf32> to vector<8x8x128xf32>
    %59 = arith.mulf %33, %58 : vector<8x8x128xf32>
    %c0_28 = arith.constant 0 : index
    %c0_29 = arith.constant 0 : index
    %60 = vector.load %arg6[%c0_28, %c0_29] : memref<8x128xf32, #tpu.memory_space<vmem>>, vector<8x128xf32>
    %61 = vector.shape_cast %60 : vector<8x128xf32> to vector<1x8x128xf32>
    %62 = vector.broadcast %61 : vector<1x8x128xf32> to vector<8x8x128xf32>
    %63 = arith.mulf %55, %62 : vector<8x8x128xf32>
    %64 = arith.addf %59, %63 : vector<8x8x128xf32>
    %c0_30 = arith.constant 0 : index
    %c0_31 = arith.constant 0 : index
    %c0_32 = arith.constant 0 : index
    %65 = vector.load %arg8[%c0_30, %c0_31, %c0_32] : memref<8x8x128xf32, #tpu.memory_space<vmem>>, vector<8x8x128xf32>
    tpu.vector_store %arg8[%c0_30, %c0_31, %c0_32], %64 {strides = array<i32>} : memref<8x8x128xf32, #tpu.memory_space<vmem>>, vector<8x8x128xf32>,
    return
  }
  func.func @transform_0(%arg0: i32) -> (i32, i32, i32) {
    %c0_i32 = arith.constant 0 : i32
    %c0_i32_0 = arith.constant 0 : i32
    %c0_i32_1 = arith.constant 0 : i32
    return %arg0, %c0_i32, %c0_i32_0 : i32, i32, i32
  }
  func.func @transform_1(%arg0: i32) -> (i32, i32, i32) {
    %c0_i32 = arith.constant 0 : i32
    %c0_i32_0 = arith.constant 0 : i32
    %c0_i32_1 = arith.constant 0 : i32
    return %arg0, %c0_i32, %c0_i32_0 : i32, i32, i32
  }
  func.func @transform_2(%arg0: i32) -> (i32, i32) {
    %c0_i32 = arith.constant 0 : i32
    %c0_i32_0 = arith.constant 0 : i32
    %c0_i32_1 = arith.constant 0 : i32
    return %c0_i32, %c0_i32_0 : i32, i32
  }
  func.func @transform_3(%arg0: i32) -> (i32, i32) {
    %c0_i32 = arith.constant 0 : i32
    %c0_i32_0 = arith.constant 0 : i32
    %c0_i32_1 = arith.constant 0 : i32
    return %c0_i32, %c0_i32_0 : i32, i32
  }
  func.func @transform_4(%arg0: i32) -> (i32, i32) {
    %c0_i32 = arith.constant 0 : i32
    %c0_i32_0 = arith.constant 0 : i32
    %c0_i32_1 = arith.constant 0 : i32
    return %c0_i32, %c0_i32_0 : i32, i32
  }
  func.func @transform_5(%arg0: i32) -> (i32, i32) {
    %c0_i32 = arith.constant 0 : i32
    %c0_i32_0 = arith.constant 0 : i32
    %c0_i32_1 = arith.constant 0 : i32
    return %c0_i32, %c0_i32_0 : i32, i32
  }
  func.func @transform_6(%arg0: i32) -> (i32, i32, i32) {
    %c0_i32 = arith.constant 0 : i32
    %c0_i32_0 = arith.constant 0 : i32
    %c0_i32_1 = arith.constant 0 : i32
    return %arg0, %c0_i32, %c0_i32_0 : i32, i32, i32
  }
  func.func @transform_7(%arg0: i32) -> (i32, i32, i32) {
    %c0_i32 = arith.constant 0 : i32
    %c0_i32_0 = arith.constant 0 : i32
    %c0_i32_1 = arith.constant 0 : i32
    return %arg0, %c0_i32, %c0_i32_0 : i32, i32, i32
  }
}

</mosaic_0001>

<bundles_post_ra>
// kernel: forward.1
= control target key start
LH: loop header
LB: loop body
LE: loop exit
PB: predicated region body
PF: predicated region fallthrough
CT: control target
= control target key end

     0   :  { %s767_s24 = smov 0   ;;  %s1150_s0 = inlined_call_operand.vmem [shape: f32[16,16,128], index: 0, kind: input, shape index: {}]   ;;  %s1151_s1 = inlined_call_operand.vmem [shape: f32[16,8,128], index: 1, kind: input, shape index: {}]   ;;  %s1152_s2 = inlined_call_operand.vmem [shape: f32[16,128], index: 2, kind: input, shape index: {}]   ;;  %s1153_s3 = inlined_call_operand.vmem [shape: f32[16,128], index: 3, kind: input, shape index: {}]   ;;  %s1154_s4 = inlined_call_operand.vmem [shape: f32[8,128], index: 4, kind: input, shape index: {}]   ;;  %s1155_s5 = inlined_call_operand.vmem [shape: f32[8,128], index: 5, kind: input, shape index: {}]   ;;  %s1156_s6 = inlined_call_operand.vmem [shape: f32[16,16,128], index: 6, kind: output, shape index: {0}]   ;;  %s1157_s7 = inlined_call_operand.vmem [shape: f32[16,8,128], index: 7, kind: output, shape index: {1}]  }
   0x1 LB: > { %s688_s25 = sadd.s32 4294967295, %s723_s24   ;;  %p692_p0 = scmp.ge.s32.totalorder %s723_s24, 1  ;;  %s723_s24 = sphi %s767_s24, %s18_s24  }
   0x2   : > { %p253_p1 = scmp.lt.s32.totalorder %s723_s24, 3 }
   0x4   : > { %p254_p2 = pnand %p692_p0, %p253_p1 }
   0x5   : > { %s693_s26 = sshll.u32 (!%p254_p2), %s688_s25, 3  ;;  %s725_s8 = smov (!%p254_p2), 127   ;;  %v339_v34 = vlaneseq (!%p254_p2)  ;;  %v970_v43 = vld [vmem:[%s1152_s2] sm:$0xff] (!%p254_p2)  ;;  %v975_v44 = vld [vmem:[%s1152_s2 + $0x8] sm:$0xff] (!%p254_p2) }
   0x6   : > { %257 = sbr.rel (%p254_p2) target bundleno = 230 (0xe6), region = 44  ;;  %p298_p3 = scmp.lt.s32.totalorder (!%p254_p2), %s693_s26, 15  ;;  %v984_v46 = vld [vmem:[%s1153_s3 + $0x8] sm:$0xff] (!%p254_p2)  ;;  %v989_v47 = vld [vmem:[%s1153_s3] sm:$0xff] (!%p254_p2) }
   0x7   : > { %s726_s9 = smov (!%p254_p2), 1   ;;  %v340_v37 = vand.u32 (!%p254_p2), 127, %v339_v34 }
   0x9   : > { %v409_v40 = vand.u32 (!%p254_p2), 1, %v340_v37 }
   0xb   : > { %vm977_vm0 = vcmp.eq.s32.totalorder (!%p254_p2), %v409_v40, 0 }
   0xd   : > { %s1161_s26 = smov (!%p298_p3, %s693_s26), 15 }
   0xe   : > { %s705_s27 = sshll.u32 %s1161_s26, 4  ;;  %s697_s10 = sshll.u32 %s1161_s26, 3 }
   0xf   : > { %s783_s30 = scalar_lea.vmem %s1150_s0, %s705_s27  ;;  %s308_s13 = scalar_lea.vmem %s1151_s1, %s697_s10 }
  0x10   : > { %v786_v0 = vld [vmem:[%s783_s30 + $0x10] sm:$0xff]  ;;  %v789_v1 = vld [vmem:[%s783_s30] sm:$0xff]  ;;  %v796_v2 = vld [vmem:[%s783_s30 + $0x18] sm:$0xff]  ;;  %s1006_s25 = scalar_lea.vmem %s1156_s6, %s705_s27  ;;  %s1119_s11 = scalar_lea.vmem %s1157_s7, %s697_s10 }
  0x11   : > { %345 = vrot.lane.b32.xlu1 %v786_v0, %s725_s8  ;;  %341 = vrot.lane.b32.xlu0 %v789_v1, %s725_s8  ;;  %v799_v3 = vld [vmem:[%s783_s30 + $0x8] sm:$0xff]  ;;  %v809_v5 = vld [vmem:[%s783_s30 + $0x20] sm:$0xff]  ;;  %v436_v48 = vmul.f32 %v970_v43, %v789_v1  ;;  %v438_v56 = vmul.f32 %v970_v43, %v786_v0  ;;  %v439_v57 = vmul.f32 %v975_v44, %v796_v2 }
  0x12   : > { %v806_v4 = vld [vmem:[%s783_s30 + $0x28] sm:$0xff]  ;;  %v816_v6 = vld [vmem:[%s783_s30 + $0x38] sm:$0xff]  ;;  %v819_v7 = vld [vmem:[%s783_s30 + $0x30] sm:$0xff]  ;;  %v437_v49 = vmul.f32 %v975_v44, %v799_v3 }
  0x13   : > { %v826_v8 = vld [vmem:[%s783_s30 + $0x48] sm:$0xff]  ;;  %v829_v9 = vld [vmem:[%s783_s30 + $0x40] sm:$0xff]  ;;  %v836_v10 = vld [vmem:[%s783_s30 + $0x58] sm:$0xff] }
  0x14   : > { %v839_v11 = vld [vmem:[%s783_s30 + $0x50] sm:$0xff]  ;;  %v846_v12 = vld [vmem:[%s783_s30 + $0x68] sm:$0xff]  ;;  %v849_v13 = vld [vmem:[%s783_s30 + $0x60] sm:$0xff] }
  0x15   : > { %347 = vrot.lane.b32.xlu1 %v796_v2, %s725_s8  ;;  %343 = vrot.lane.b32.xlu0 %v799_v3, %s725_s8  ;;  %v856_v14 = vld [vmem:[%s783_s30 + $0x78] sm:$0xff]  ;;  %v859_v15 = vld [vmem:[%s783_s30 + $0x70] sm:$0xff] }
  0x16   : > { %v903_v16 = vld [vmem:[%s308_s13 + $0x8] sm:$0xff]  ;;  %v905_v17 = vld [vmem:[%s308_s13] sm:$0xff]  ;;  %v911_v18 = vld [vmem:[%s308_s13 + $0x18] sm:$0xff] }
  0x17   : > { %v913_v19 = vld [vmem:[%s308_s13 + $0x10] sm:$0xff]  ;;  %v919_v20 = vld [vmem:[%s308_s13 + $0x28] sm:$0xff]  ;;  %v921_v21 = vld [vmem:[%s308_s13 + $0x20] sm:$0xff] }
  0x18   : > { %v927_v22 = vld [vmem:[%s308_s13 + $0x38] sm:$0xff]  ;;  %v929_v23 = vld [vmem:[%s308_s13 + $0x30] sm:$0xff] }
  0x19   : > { %351 = vrot.lane.b32.xlu1 %v806_v4, %s725_s8  ;;  %349 = vrot.lane.b32.xlu0 %v809_v5, %s725_s8 }
  0x1d   : > { %355 = vrot.lane.b32.xlu1 %v816_v6, %s725_s8  ;;  %353 = vrot.lane.b32.xlu0 %v819_v7, %s725_s8 }
  0x21   : > { %359 = vrot.lane.b32.xlu1 %v826_v8, %s725_s8  ;;  %357 = vrot.lane.b32.xlu0 %v829_v9, %s725_s8 }
  0x25   : > { %363 = vrot.lane.b32.xlu1 %v836_v10, %s725_s8  ;;  %361 = vrot.lane.b32.xlu0 %v839_v11, %s725_s8 }
  0x29   : > { %367 = vrot.lane.b32.xlu1 %v846_v12, %s725_s8  ;;  %365 = vrot.lane.b32.xlu0 %v849_v13, %s725_s8 }
  0x2d   : > { %371 = vrot.lane.b32.xlu1 %v856_v14, %s725_s8  ;;  %369 = vrot.lane.b32.xlu0 %v859_v15, %s725_s8 }
  0x31   : > { %375 = vrot.lane.b32.xlu1 %v799_v3, %s726_s9  ;;  %373 = vrot.lane.b32.xlu0 %v789_v1, %s726_s9  ;;  %v440_v3 = vmul.f32 %v970_v43, %v809_v5 }
  0x35   : > { %379 = vrot.lane.b32.xlu1 %v796_v2, %s726_s9  ;;  %377 = vrot.lane.b32.xlu0 %v786_v0, %s726_s9  ;;  %v441_v2 = vmul.f32 %v975_v44, %v806_v4 }
  0x39   : > { %383 = vrot.lane.b32.xlu1 %v806_v4, %s726_s9  ;;  %381 = vrot.lane.b32.xlu0 %v809_v5, %s726_s9  ;;  %v443_v5 = vmul.f32 %v975_v44, %v816_v6 }
  0x3d   : > { %387 = vrot.lane.b32.xlu1 %v816_v6, %s726_s9  ;;  %385 = vrot.lane.b32.xlu0 %v819_v7, %s726_s9 }
  0x41   : > { %391 = vrot.lane.b32.xlu1 %v826_v8, %s726_s9  ;;  %389 = vrot.lane.b32.xlu0 %v829_v9, %s726_s9 }
  0x45   : > { %395 = vrot.lane.b32.xlu1 %v836_v10, %s726_s9  ;;  %393 = vrot.lane.b32.xlu0 %v839_v11, %s726_s9 }
  0x49   : > { %399 = vrot.lane.b32.xlu1 %v846_v12, %s726_s9  ;;  %397 = vrot.lane.b32.xlu0 %v849_v13, %s726_s9 }
  0x4d   : > { %403 = vrot.lane.b32.xlu1 %v856_v14, %s726_s9  ;;  %401 = vrot.lane.b32.xlu0 %v859_v15, %s726_s9 }
  0x51   : > { %512 = vrot.lane.b32.xlu1 %v903_v16, %s725_s8  ;;  %510 = vrot.lane.b32.xlu0 %v905_v17, %s725_s8 }
  0x55   : > { %516 = vrot.lane.b32.xlu1 %v911_v18, %s725_s8  ;;  %514 = vrot.lane.b32.xlu0 %v913_v19, %s725_s8 }
  0x59   : > { %520 = vrot.lane.b32.xlu1 %v919_v20, %s725_s8  ;;  %518 = vrot.lane.b32.xlu0 %v921_v21, %s725_s8 }
  0x5d   : > { %524 = vrot.lane.b32.xlu1 %v927_v22, %s725_s8  ;;  %522 = vrot.lane.b32.xlu0 %v929_v23, %s725_s8 }
  0x61   : > { %528 = vrot.lane.b32.xlu1 %v903_v16, %s726_s9  ;;  %526 = vrot.lane.b32.xlu0 %v905_v17, %s726_s9 }
  0x65   : > { %532 = vrot.lane.b32.xlu1 %v911_v18, %s726_s9  ;;  %530 = vrot.lane.b32.xlu0 %v913_v19, %s726_s9 }
  0x69   : > { %536 = vrot.lane.b32.xlu1 %v919_v20, %s726_s9  ;;  %534 = vrot.lane.b32.xlu0 %v921_v21, %s726_s9 }
  0x6d   : > { %540 = vrot.lane.b32.xlu1 %v927_v22, %s726_s9  ;;  %538 = vrot.lane.b32.xlu0 %v929_v23, %s726_s9 }
  0x83   : > { %v346_v24 = vpop.permute.xlu1 %345  ;;  %v342_v25 = vpop.permute.xlu0 %341 }
  0x87   : > { %v348_v26 = vpop.permute.xlu1 %347  ;;  %v344_v27 = vpop.permute.xlu0 %343 }
  0x8b   : > { %v352_v28 = vpop.permute.xlu1 %351  ;;  %v350_v29 = vpop.permute.xlu0 %349 }
  0x8f   : > { %v356_v30 = vpop.permute.xlu1 %355  ;;  %v354_v31 = vpop.permute.xlu0 %353 }
  0x93   : > { %v951_v32 = vpop.permute.xlu1 %359  ;;  %v953_v33 = vpop.permute.xlu0 %357 }
  0x97   : > { %v955_v35 = vpop.permute.xlu1 %363  ;;  %v957_v36 = vpop.permute.xlu0 %361 }
  0x9b   : > { %v959_v38 = vpop.permute.xlu1 %367  ;;  %v961_v39 = vpop.permute.xlu0 %365 }
  0x9f   : > { %v963_v41 = vpop.permute.xlu1 %371  ;;  %v965_v42 = vpop.permute.xlu0 %369 }
  0xa3   : > { %v376_v50 = vpop.permute.xlu1 %375  ;;  %v374_v51 = vpop.permute.xlu0 %373 }
  0xa4   : > { %v419_v52 = vsel %vm977_vm0, %v344_v27, %v376_v50  ;;  %v418_v53 = vsel %vm977_vm0, %v342_v25, %v374_v51 }
  0xa5   : > { %v455_v54 = vmul.f32 %v984_v46, %v419_v52  ;;  %v454_v55 = vmul.f32 %v989_v47, %v418_v53 }
  0xa7   : > { %v471_v58 = vadd.f32 %v455_v54, %v437_v49  ;;  %v470_v59 = vadd.f32 %v454_v55, %v436_v48  ;;  %v380_v60 = vpop.permute.xlu1 %379  ;;  %v378_v61 = vpop.permute.xlu0 %377  ;;  %v442_v48 = vmul.f32 %v970_v43, %v819_v7  ;;  %v445_v7 = vmul.f32 %v975_v44, %v826_v8 }
  0xa8   : > { %v421_v62 = vsel %vm977_vm0, %v348_v26, %v380_v60  ;;  %v420_v63 = vsel %vm977_vm0, %v346_v24, %v378_v61  ;;  %v444_v54 = vmul.f32 %v970_v43, %v829_v9  ;;  %v446_v60 = vmul.f32 %v970_v43, %v839_v11 }
  0xa9   : > { %487 = vst [vmem:[%s1006_s25 + $0x8] sm:$0xff] %v471_v58  ;;  %486 = vst [vmem:[%s1006_s25] sm:$0xff] %v470_v59  ;;  %v457_v1 = vmul.f32 %v984_v46, %v421_v62  ;;  %v456_v0 = vmul.f32 %v989_v47, %v420_v63  ;;  %v447_v59 = vmul.f32 %v975_v44, %v836_v10 }
  0xab   : > { %v473_v25 = vadd.f32 %v457_v1, %v439_v57  ;;  %v472_v27 = vadd.f32 %v456_v0, %v438_v56  ;;  %v384_v34 = vpop.permute.xlu1 %383  ;;  %v382_v26 = vpop.permute.xlu0 %381  ;;  %v449_v0 = vmul.f32 %v975_v44, %v846_v12 }
  0xac   : > { %v423_v24 = vsel %vm977_vm0, %v352_v28, %v384_v34  ;;  %v422_v37 = vsel %vm977_vm0, %v350_v29, %v382_v26  ;;  %v451_v26 = vmul.f32 %v975_v44, %v856_v14 }
  0xad   : > { %489 = vst [vmem:[%s1006_s25 + $0x18] sm:$0xff] %v473_v25  ;;  %488 = vst [vmem:[%s1006_s25 + $0x10] sm:$0xff] %v472_v27  ;;  %v459_v40 = vmul.f32 %v984_v46, %v423_v24  ;;  %v458_v4 = vmul.f32 %v989_v47, %v422_v37  ;;  %v450_v24 = vmul.f32 %v970_v43, %v859_v15 }
  0xaf   : > { %v475_v49 = vadd.f32 %v459_v40, %v441_v2  ;;  %v474_v50 = vadd.f32 %v458_v4, %v440_v3  ;;  %v388_v51 = vpop.permute.xlu1 %387  ;;  %v386_v28 = vpop.permute.xlu0 %385  ;;  %v448_v2 = vmul.f32 %v970_v43, %v849_v13 }
  0xb0   : > { %v425_v29 = vsel %vm977_vm0, %v356_v30, %v388_v51  ;;  %v424_v52 = vsel %vm977_vm0, %v354_v31, %v386_v28 }
  0xb1   : > { %491 = vst [vmem:[%s1006_s25 + $0x28] sm:$0xff] %v475_v49  ;;  %490 = vst [vmem:[%s1006_s25 + $0x20] sm:$0xff] %v474_v50  ;;  %v461_v53 = vmul.f32 %v984_v46, %v425_v29  ;;  %v460_v6 = vmul.f32 %v989_v47, %v424_v52 }
  0xb3   : > { %v477_v55 = vadd.f32 %v461_v53, %v443_v5  ;;  %v476_v56 = vadd.f32 %v460_v6, %v442_v48  ;;  %v392_v57 = vpop.permute.xlu1 %391  ;;  %v390_v30 = vpop.permute.xlu0 %389 }
  0xb4   : > { %v427_v31 = vsel %vm977_vm0, %v951_v32, %v392_v57  ;;  %v426_v58 = vsel %vm977_vm0, %v953_v33, %v390_v30 }
  0xb5   : > { %493 = vst [vmem:[%s1006_s25 + $0x38] sm:$0xff] %v477_v55  ;;  %492 = vst [vmem:[%s1006_s25 + $0x30] sm:$0xff] %v476_v56  ;;  %v463_v8 = vmul.f32 %v984_v46, %v427_v31  ;;  %v462_v9 = vmul.f32 %v989_v47, %v426_v58 }
  0xb7   : > { %v479_v61 = vadd.f32 %v463_v8, %v445_v7  ;;  %v478_v62 = vadd.f32 %v462_v9, %v444_v54  ;;  %v396_v63 = vpop.permute.xlu1 %395  ;;  %v394_v32 = vpop.permute.xlu0 %393 }
  0xb8   : > { %v429_v33 = vsel %vm977_vm0, %v955_v35, %v396_v63  ;;  %v428_v1 = vsel %vm977_vm0, %v957_v36, %v394_v32 }
  0xb9   : > { %495 = vst [vmem:[%s1006_s25 + $0x48] sm:$0xff] %v479_v61  ;;  %494 = vst [vmem:[%s1006_s25 + $0x40] sm:$0xff] %v478_v62  ;;  %v465_v10 = vmul.f32 %v984_v46, %v429_v33  ;;  %v464_v11 = vmul.f32 %v989_v47, %v428_v1 }
  0xbb   : > { %v481_v3 = vadd.f32 %v465_v10, %v447_v59  ;;  %v480_v25 = vadd.f32 %v464_v11, %v446_v60  ;;  %v400_v27 = vpop.permute.xlu1 %399  ;;  %v398_v35 = vpop.permute.xlu0 %397 }
  0xbc   : > { %v431_v36 = vsel %vm977_vm0, %v959_v38, %v400_v27  ;;  %v430_v34 = vsel %vm977_vm0, %v961_v39, %v398_v35 }
  0xbd   : > { %497 = vst [vmem:[%s1006_s25 + $0x58] sm:$0xff] %v481_v3  ;;  %496 = vst [vmem:[%s1006_s25 + $0x50] sm:$0xff] %v480_v25  ;;  %v467_v12 = vmul.f32 %v984_v46, %v431_v36  ;;  %v466_v13 = vmul.f32 %v989_v47, %v430_v34 }
  0xbf   : > { %v483_v37 = vadd.f32 %v467_v12, %v449_v0  ;;  %v482_v38 = vadd.f32 %v466_v13, %v448_v2  ;;  %v404_v40 = vpop.permute.xlu1 %403  ;;  %v402_v4 = vpop.permute.xlu0 %401 }
  0xc0   : > { %v433_v39 = vsel %vm977_vm0, %v963_v41, %v404_v40  ;;  %v432_v5 = vsel %vm977_vm0, %v965_v42, %v402_v4  ;;  %v550_v42 = vld [vmem:[%s1154_s4] sm:$0xff] }
  0xc1   : > { %499 = vst [vmem:[%s1006_s25 + $0x68] sm:$0xff] %v483_v37  ;;  %498 = vst [vmem:[%s1006_s25 + $0x60] sm:$0xff] %v482_v38  ;;  %v469_v14 = vmul.f32 %v984_v46, %v433_v39  ;;  %v468_v44 = vmul.f32 %v989_v47, %v432_v5  ;;  %v559_v46 = vld [vmem:[%s1155_s5] sm:$0xff]  ;;  %v552_v47 = vmul.f32 %v550_v42, %v903_v16 }
  0xc2   : > { %v551_v53 = vmul.f32 %v550_v42, %v905_v17  ;;  %v554_v16 = vmul.f32 %v550_v42, %v911_v18  ;;  %v553_v17 = vmul.f32 %v550_v42, %v913_v19  ;;  %v556_v18 = vmul.f32 %v550_v42, %v919_v20 }
  0xc3   : > { %v485_v15 = vadd.f32 %v469_v14, %v451_v26  ;;  %v484_v43 = vadd.f32 %v468_v44, %v450_v24  ;;  %v513_v48 = vpop.permute.xlu1 %512  ;;  %v511_v49 = vpop.permute.xlu0 %510  ;;  %v555_v19 = vmul.f32 %v550_v42, %v921_v21  ;;  %v558_v20 = vmul.f32 %v550_v42, %v927_v22 }
  0xc4   : > { %v557_v21 = vmul.f32 %v550_v42, %v929_v23 }
  0xc5   : > { %501 = vst [vmem:[%s1006_s25 + $0x78] sm:$0xff] %v485_v15  ;;  %500 = vst [vmem:[%s1006_s25 + $0x70] sm:$0xff] %v484_v43 }
  0xc7   : > { %v517_v50 = vpop.permute.xlu1 %516  ;;  %v515_v51 = vpop.permute.xlu0 %514 }
  0xcb   : > { %v521_v41 = vpop.permute.xlu1 %520  ;;  %v519_v28 = vpop.permute.xlu0 %518 }
  0xcf   : > { %v525_v29 = vpop.permute.xlu1 %524  ;;  %v523_v52 = vpop.permute.xlu0 %522 }
  0xd3   : > { %v529_v6 = vpop.permute.xlu1 %528  ;;  %v527_v7 = vpop.permute.xlu0 %526 }
  0xd4   : > { %v543_v54 = vsel %vm977_vm0, %v513_v48, %v529_v6  ;;  %v542_v55 = vsel %vm977_vm0, %v511_v49, %v527_v7 }
  0xd5   : > { %v561_v56 = vmul.f32 %v559_v46, %v543_v54  ;;  %v560_v57 = vmul.f32 %v559_v46, %v542_v55 }
  0xd7   : > { %v569_v30 = vadd.f32 %v561_v56, %v552_v47  ;;  %v568_v31 = vadd.f32 %v560_v57, %v551_v53  ;;  %v533_v58 = vpop.permute.xlu1 %532  ;;  %v531_v8 = vpop.permute.xlu0 %530 }
  0xd8   : > { %v545_v9 = vsel %vm977_vm0, %v517_v50, %v533_v58  ;;  %v544_v59 = vsel %vm977_vm0, %v515_v51, %v531_v8 }
  0xd9   : > { %577 = vst [vmem:[%s1119_s11 + $0x8] sm:$0xff] %v569_v30  ;;  %576 = vst [vmem:[%s1119_s11] sm:$0xff] %v568_v31  ;;  %v563_v60 = vmul.f32 %v559_v46, %v545_v9  ;;  %v562_v61 = vmul.f32 %v559_v46, %v544_v59 }
  0xdb   : > { %v571_v62 = vadd.f32 %v563_v60, %v554_v16  ;;  %v570_v63 = vadd.f32 %v562_v61, %v553_v17  ;;  %v537_v32 = vpop.permute.xlu1 %536  ;;  %v535_v33 = vpop.permute.xlu0 %534 }
  0xdc   : > { %v547_v1 = vsel %vm977_vm0, %v521_v41, %v537_v32  ;;  %v546_v10 = vsel %vm977_vm0, %v519_v28, %v535_v33 }
  0xdd   : > { %579 = vst [vmem:[%s1119_s11 + $0x18] sm:$0xff] %v571_v62  ;;  %578 = vst [vmem:[%s1119_s11 + $0x10] sm:$0xff] %v570_v63  ;;  %v565_v11 = vmul.f32 %v559_v46, %v547_v1  ;;  %v564_v0 = vmul.f32 %v559_v46, %v546_v10 }
  0xdf   : > { %v573_v2 = vadd.f32 %v565_v11, %v556_v18  ;;  %v572_v3 = vadd.f32 %v564_v0, %v555_v19  ;;  %v541_v25 = vpop.permute.xlu1 %540  ;;  %v539_v27 = vpop.permute.xlu0 %538 }
  0xe0   : > { %v549_v35 = vsel %vm977_vm0, %v525_v29, %v541_v25  ;;  %v548_v36 = vsel %vm977_vm0, %v523_v52, %v539_v27 }
  0xe1   : > { %581 = vst [vmem:[%s1119_s11 + $0x28] sm:$0xff] %v573_v2  ;;  %580 = vst [vmem:[%s1119_s11 + $0x20] sm:$0xff] %v572_v3  ;;  %v567_v34 = vmul.f32 %v559_v46, %v549_v35  ;;  %v566_v12 = vmul.f32 %v559_v46, %v548_v36 }
  0xe3   : > { %v575_v13 = vadd.f32 %v567_v34, %v558_v20  ;;  %v574_v26 = vadd.f32 %v566_v12, %v557_v21 }
  0xe5   : > { %583 = vst [vmem:[%s1119_s11 + $0x38] sm:$0xff] %v575_v13  ;;  %582 = vst [vmem:[%s1119_s11 + $0x30] sm:$0xff] %v574_v26 }
  0xe6 PF: > { %s18_s24 = sadd.s32 1, %s723_s24  }
  0xe7   : > { %p15_p4 = scmp.ge.s32.totalorder %s18_s24, 4  }
  0xe9   :  { %17 = sbr.rel (!%p15_p4) target bundleno = 1 (0x1), region = 89 }

</bundles_post_ra>
